<compile_context>
chip_gen: v5e
topology: v5e:2x2
jax: 0.10.0
libtpu: 0.0.40
codegen_flags: <defaults>
</compile_context>

<pallas_src>
import functools

import jax
import jax.numpy as jnp
from jax import lax
from jax.experimental import pallas as pl
from jax.experimental.pallas import tpu as pltpu


def _round_up(v, m):
    return (v + m - 1) // m * m


def _make_conv_bn_relu_kernel(K: int):
    def kernel(xc_ref, hl_ref, w_ref, shift_ref, o_ref):
        """One (batch, L-tile, Cout-tile) block per grid step.

        xc_ref:    (1, LT, Cin_p)      current L tile of the padded input (bf16)
        hl_ref:    (1, 1, HALO, Cin_p) first K-1 rows of the next tile (bf16)
        w_ref:     (K, Cin_p, CO_T)    BN-scale-folded conv taps (bf16)
        shift_ref: (1, CO_T)           folded BN shift (fp32)
        o_ref:     (1, LT, CO_T)       bf16 output tile
        """
        xc = xc_ref[0]                                    # (LT, Cin_p) bf16, no cast
        # Tap 0: rows [0, LT) of this tile.
        acc = jnp.dot(xc, w_ref[0], preferred_element_type=jnp.float32)
        if K > 1:
            hl = hl_ref[0, 0]                             # (HALO, Cin_p) bf16
            for k in range(1, K):
                # Tap k: rows [k, LT) of this tile + first k halo rows.
                win = jnp.concatenate([xc[k:, :], hl[:k, :]], axis=0)
                acc += jnp.dot(win, w_ref[k], preferred_element_type=jnp.float32)
        y = acc + shift_ref[...]                          # BN shift (scale folded in w)
        o_ref[0] = jnp.maximum(y, 0.0).astype(o_ref.dtype)  # ReLU, bf16 store

    return kernel


@functools.partial(jax.jit, static_argnames=("eps", "l_tile"))
def conv_block_1d(x_ncl, weight, gamma, beta, run_mean, run_var,
                  *, eps=1e-5, l_tile=None):
    """ConvBlock1D forward. x_ncl: (N, Cin, L) (PyTorch layout) -> (N, Cout, L)."""
    N, Cin, L = x_ncl.shape
    Cout, Cin_w, K = weight.shape
    assert Cin_w == Cin
    # TODO(synk): even kernel_size yields L+1 outputs in PyTorch (pad = K//2);
    #             only odd kernel sizes are supported here.
    assert K % 2 == 1, "only odd kernel_size supported"
    pad = K // 2

    # Lane-align channels -> unmasked output stores, full MXU columns.
    Cin_p = _round_up(Cin, 128)
    Cout_p = _round_up(Cout, 128)
    HALO = _round_up(max(K - 1, 1), 16)          # bf16 sublane-packed halo rows

    # ---- generation-aware VMEM budget / tile sizing ----
    try:
        vmem_cap = int(pltpu.get_tpu_info().vmem_capacity_bytes)
    except Exception:  # pragma: no cover - conservative fallback
        vmem_cap = 64 * 1024 * 1024
    vmem_budget = max(24 * 1024 * 1024, min(vmem_cap // 2, 80 * 1024 * 1024))

    def est(lt, co_t):
        return (2 * lt * Cin_p * 2           # x tile, double-buffered (bf16)
                + 2 * HALO * Cin_p * 2       # halo slab, double-buffered (bf16)
                + 2 * K * Cin_p * co_t * 2   # weights, double-buffered (bf16)
                + 2 * co_t * 4               # shift
                + 2 * lt * co_t * 2          # bf16 output, double-buffered
                + lt * co_t * 4              # f32 accumulator value
                + 2 * lt * Cin_p * 2)        # window temporaries

    lt_floor = max(16, HALO)
    max_lt = _round_up(L, 16)
    max_lt = min(max_lt, _round_up(int(l_tile), 16)) if l_tile is not None \
        else min(max_lt, 2048)
    max_lt = max(max_lt, lt_floor)
    lt = max_lt
    while lt > lt_floor and est(lt, Cout_p) > (vmem_budget * 6) // 10:
        lt -= 16
    L_TILE = max(lt_floor, lt)
    num_lt = pl.cdiv(L, L_TILE)

    # Guarantee >= 4 parallel programs where possible (feeds v7x's 2 TCs).
    while N * num_lt < 4 and L_TILE >= 2 * lt_floor:
        L_TILE = _round_up(L_TILE // 2, 16)
        num_lt = pl.cdiv(L, L_TILE)

    # If the (N, L-tile) grid is still tiny, split Cout into 128-multiples.
    CO_TILE = Cout_p
    if N * num_lt < 4 and Cout_p > 128:
        CO_TILE = 128
        for t in range(Cout_p // 128, 0, -1):
            cand = t * 128
            if Cout_p % cand == 0 and N * num_lt * (Cout_p // cand) >= 4:
                CO_TILE = cand
                break
    num_co = Cout_p // CO_TILE

    L_alloc = num_lt * L_TILE + HALO

    # ---- wrapper glue (fused by jit with the pallas_call): layout, padding,
    #      halo slab, BN folding ----
    x_nlc = jnp.transpose(x_ncl, (0, 2, 1)).astype(jnp.bfloat16)       # (N, L, Cin)
    x_pad = jnp.pad(x_nlc, ((0, 0),
                            (pad, L_alloc - L - pad),
                            (0, Cin_p - Cin)))                         # (N, L_alloc, Cin_p)

    # Small halo slab: for tile t, the first HALO rows of tile t+1.
    tail = x_pad[:, L_TILE:, :]                                        # (N, L_alloc-L_TILE, Cin_p)
    tail = jnp.pad(tail, ((0, 0), (0, num_lt * L_TILE - tail.shape[1]), (0, 0)))
    halo = tail.reshape(N, num_lt, L_TILE, Cin_p)[:, :, :HALO, :]      # (N, num_lt, HALO, Cin_p)

    # Fold inference BatchNorm: scale into conv weights, shift kept as bias.
    scale = gamma / jnp.sqrt(run_var + eps)                            # (Cout,)
    shift = (beta - run_mean * scale).astype(jnp.float32)              # (Cout,)
    w_kio = jnp.transpose(weight, (2, 1, 0)) * scale[None, None, :]    # (K, Cin, Cout)
    w_kio = jnp.pad(w_kio, ((0, 0), (0, Cin_p - Cin), (0, Cout_p - Cout)))
    w_kio = w_kio.astype(jnp.bfloat16)                                 # (K, Cin_p, Cout_p)
    shift_p = jnp.pad(shift, (0, Cout_p - Cout)).reshape(1, Cout_p)

    vmem_limit = int(min(vmem_cap * 3 // 4,
                         max(16 * 1024 * 1024, 2 * est(L_TILE, CO_TILE))))

    cost = pl.CostEstimate(
        flops=2 * N * L * K * Cin * Cout,
        transcendentals=0,
        bytes_accessed=(N * L * Cin * 2 + K * Cin_p * Cout_p * 2 + N * L * Cout * 2))

    out = pl.pallas_call(
        _make_conv_bn_relu_kernel(K),
        out_shape=jax.ShapeDtypeStruct((N, num_lt * L_TILE, Cout_p), jnp.bfloat16),
        grid_spec=pltpu.PrefetchScalarGridSpec(
            num_scalar_prefetch=0,
            grid=(N, num_lt, num_co),
            in_specs=[
                pl.BlockSpec((1, L_TILE, Cin_p), lambda n, t, c: (n, t, 0)),
                pl.BlockSpec((1, 1, HALO, Cin_p), lambda n, t, c: (n, t, 0, 0)),
                # TODO(synk): pipeline_mode=pl.Buffered(1) on the two constant
                #             operands would drop their second VMEM buffer.
                pl.BlockSpec((K, Cin_p, CO_TILE), lambda n, t, c: (0, 0, c)),
                pl.BlockSpec((1, CO_TILE), lambda n, t, c: (0, c)),
            ],
            out_specs=pl.BlockSpec((1, L_TILE, CO_TILE), lambda n, t, c: (n, t, c)),
        ),
        compiler_params=pltpu.CompilerParams(
            dimension_semantics=("parallel", "parallel", "parallel"),
            vmem_limit_bytes=vmem_limit),
        cost_estimate=cost,
    )(x_pad, halo, w_kio, shift_p)

    out = out[:, :L, :Cout]                                            # drop padding
    return jnp.transpose(out, (0, 2, 1)).astype(x_ncl.dtype)           # (N, Cout, L)


def reference_conv_block_1d(x_ncl, weight, gamma, beta, run_mean, run_var,
                            *, eps=1e-5, quantize=True):
    """Pure-JAX reference (lax conv).  With quantize=True it mirrors the
    kernel's bf16 input/weight quantization (fp32 accumulation)."""
    K = weight.shape[-1]
    pad = K // 2
    scale = gamma / jnp.sqrt(run_var + eps)
    shift = beta - run_mean * scale
    w = weight * scale[:, None, None]
    x = x_ncl
    if quantize:
        w = w.astype(jnp.bfloat16).astype(jnp.float32)
        x = x.astype(jnp.bfloat16).astype(jnp.float32)
    y = lax.conv_general_dilated(
        x, w, window_strides=(1,), padding=[(pad, pad)],
        dimension_numbers=("NCH", "OIH", "NCH"),
        precision=lax.Precision.HIGHEST)
    return jnp.maximum(y + shift[None, :, None], 0.0)


if __name__ == "__main__":
    def run_case(key, N, Cin, Cout, L, K):
        k_x, k_w, k_g, k_b, k_m, k_v = jax.random.split(key, 6)
        x = jax.random.normal(k_x, (N, Cin, L), dtype=jnp.float32)          # (N,C,M)
        weight = 0.2 * jax.random.normal(k_w, (Cout, Cin, K), dtype=jnp.float32)
        gamma = 1.0 + 0.1 * jax.random.normal(k_g, (Cout,), dtype=jnp.float32)
        beta = 0.1 * jax.random.normal(k_b, (Cout,), dtype=jnp.float32)
        run_mean = 0.1 * jax.random.normal(k_m, (Cout,), dtype=jnp.float32)
        run_var = 0.5 + jnp.abs(jax.random.normal(k_v, (Cout,), dtype=jnp.float32))

        out = conv_block_1d(x, weight, gamma, beta, run_mean, run_var)
        out = jax.block_until_ready(out)
        assert out.shape == (N, Cout, L), out.shape

        # Check against a reference with the same bf16 quantization
        # (tolerance covers the bf16 output store).
        ref_q = reference_conv_block_1d(x, weight, gamma, beta, run_mean, run_var,
                                        quantize=True)
        assert jnp.allclose(out, ref_q, atol=3e-2, rtol=3e-2), \
            float(jnp.max(jnp.abs(out - ref_q)))

        # Loose check against the full-precision (fp32) module semantics.
        ref_f = reference_conv_block_1d(x, weight, gamma, beta, run_mean, run_var,
                                        quantize=False)
        assert jnp.allclose(out, ref_f, atol=2e-1, rtol=2e-1), \
            float(jnp.max(jnp.abs(out - ref_f)))

    key = jax.random.PRNGKey(0)
    k1, k2 = jax.random.split(key)
    run_case(k1, N=2, Cin=4, Cout=8, L=16, K=3)    # single L tile
    run_case(k2, N=2, Cin=6, Cout=10, L=48, K=5)   # multiple L tiles (cross-tile halo)
    print("KERNEL_OK")
</pallas_src>

<mosaic_0001>
module attributes {stable_mosaic.version = 11 : i64} {
  func.func @kernel(%arg0: i32, %arg1: i32, %arg2: i32, %arg3: memref<1x16x128xbf16, #tpu.memory_space<vmem>>, %arg4: memref<1x1x16x128xbf16, #tpu.memory_space<vmem>>, %arg5: memref<3x128x128xbf16, #tpu.memory_space<vmem>>, %arg6: memref<1x128xf32, #tpu.memory_space<vmem>>, %arg7: memref<1x16x128xbf16, #tpu.memory_space<vmem>>) attributes {dimension_semantics = [#tpu.dimension_semantics<parallel>, #tpu.dimension_semantics<parallel>, #tpu.dimension_semantics<parallel>], iteration_bounds = array<i64: 2, 1, 1>, scalar_prefetch = 0 : i64, scratch_operands = 0 : i64, tpu.core_type = #tpu.core_type<tc>, window_params = [{transform_indices = @transform_0, window_bounds = array<i64: 1, 16, 128>}, {transform_indices = @transform_1, window_bounds = array<i64: 1, 1, 16, 128>}, {transform_indices = @transform_2, window_bounds = array<i64: 3, 128, 128>}, {transform_indices = @transform_3, window_bounds = array<i64: 1, 128>}, {transform_indices = @transform_4, window_bounds = array<i64: 1, 16, 128>}]} {
    %c0 = arith.constant 0 : index
    %c0_0 = arith.constant 0 : index
    %c0_1 = arith.constant 0 : index
    %0 = vector.load %arg3[%c0, %c0_0, %c0_1] : memref<1x16x128xbf16, #tpu.memory_space<vmem>>, vector<1x16x128xbf16>
    %1 = vector.shape_cast %0 : vector<1x16x128xbf16> to vector<16x128xbf16>
    %c0_2 = arith.constant 0 : index
    %c0_3 = arith.constant 0 : index
    %c0_4 = arith.constant 0 : index
    %2 = vector.load %arg5[%c0_2, %c0_3, %c0_4] : memref<3x128x128xbf16, #tpu.memory_space<vmem>>, vector<1x128x128xbf16>
    %3 = vector.shape_cast %2 : vector<1x128x128xbf16> to vector<128x128xbf16>
    %cst = arith.constant dense<0.000000e+00> : vector<16x128xf32>
    %4 = tpu.matmul %1, %3, %cst {dimension_numbers = #tpu.dot_dimension_numbers<[1], [0], [0], [1], [0, 0, 1, 1], [], []>} : vector<16x128xbf16>, vector<128x128xbf16>, vector<16x128xf32> -> vector<16x128xf32>
    %c0_5 = arith.constant 0 : index
    %c0_6 = arith.constant 0 : index
    %c0_7 = arith.constant 0 : index
    %c0_8 = arith.constant 0 : index
    %5 = vector.load %arg4[%c0_5, %c0_6, %c0_7, %c0_8] : memref<1x1x16x128xbf16, #tpu.memory_space<vmem>>, vector<1x1x16x128xbf16>
    %6 = vector.shape_cast %5 : vector<1x1x16x128xbf16> to vector<16x128xbf16>
    %7 = vector.extract_strided_slice %1 {offsets = [1, 0], sizes = [15, 128], strides = [1, 1]} : vector<16x128xbf16> to vector<15x128xbf16>
    %8 = vector.extract_strided_slice %6 {offsets = [0, 0], sizes = [1, 128], strides = [1, 1]} : vector<16x128xbf16> to vector<1x128xbf16>
    %9 = tpu.concatenate %7, %8 in 0 : vector<15x128xbf16>, vector<1x128xbf16> -> vector<16x128xbf16>
    %c1 = arith.constant 1 : index
    %c0_9 = arith.constant 0 : index
    %c0_10 = arith.constant 0 : index
    %10 = vector.load %arg5[%c1, %c0_9, %c0_10] : memref<3x128x128xbf16, #tpu.memory_space<vmem>>, vector<1x128x128xbf16>
    %11 = vector.shape_cast %10 : vector<1x128x128xbf16> to vector<128x128xbf16>
    %cst_11 = arith.constant dense<0.000000e+00> : vector<16x128xf32>
    %12 = tpu.matmul %9, %11, %cst_11 {dimension_numbers = #tpu.dot_dimension_numbers<[1], [0], [0], [1], [0, 0, 1, 1], [], []>} : vector<16x128xbf16>, vector<128x128xbf16>, vector<16x128xf32> -> vector<16x128xf32>
    %13 = arith.addf %4, %12 : vector<16x128xf32>
    %14 = vector.extract_strided_slice %1 {offsets = [2, 0], sizes = [14, 128], strides = [1, 1]} : vector<16x128xbf16> to vector<14x128xbf16>
    %15 = vector.extract_strided_slice %6 {offsets = [0, 0], sizes = [2, 128], strides = [1, 1]} : vector<16x128xbf16> to vector<2x128xbf16>
    %16 = tpu.concatenate %14, %15 in 0 : vector<14x128xbf16>, vector<2x128xbf16> -> vector<16x128xbf16>
    %c2 = arith.constant 2 : index
    %c0_12 = arith.constant 0 : index
    %c0_13 = arith.constant 0 : index
    %17 = vector.load %arg5[%c2, %c0_12, %c0_13] : memref<3x128x128xbf16, #tpu.memory_space<vmem>>, vector<1x128x128xbf16>
    %18 = vector.shape_cast %17 : vector<1x128x128xbf16> to vector<128x128xbf16>
    %cst_14 = arith.constant dense<0.000000e+00> : vector<16x128xf32>
    %19 = tpu.matmul %16, %18, %cst_14 {dimension_numbers = #tpu.dot_dimension_numbers<[1], [0], [0], [1], [0, 0, 1, 1], [], []>} : vector<16x128xbf16>, vector<128x128xbf16>, vector<16x128xf32> -> vector<16x128xf32>
    %20 = arith.addf %13, %19 : vector<16x128xf32>
    %c0_15 = arith.constant 0 : index
    %c0_16 = arith.constant 0 : index
    %21 = vector.load %arg6[%c0_15, %c0_16] : memref<1x128xf32, #tpu.memory_space<vmem>>, vector<1x128xf32>
    %22 = vector.broadcast %21 : vector<1x128xf32> to vector<16x128xf32>
    %23 = arith.addf %20, %22 : vector<16x128xf32>
    %cst_17 = arith.constant 0.000000e+00 : f32
    %24 = vector.broadcast %cst_17 : f32 to vector<16x128xf32>
    %25 = arith.maximumf %23, %24 : vector<16x128xf32>
    %26 = arith.truncf %25 : vector<16x128xf32> to vector<16x128xbf16>
    %c0_18 = arith.constant 0 : index
    %c0_19 = arith.constant 0 : index
    %c0_20 = arith.constant 0 : index
    %27 = vector.load %arg7[%c0_18, %c0_19, %c0_20] : memref<1x16x128xbf16, #tpu.memory_space<vmem>>, vector<1x16x128xbf16>
    %28 = vector.shape_cast %27 : vector<1x16x128xbf16> to vector<16x128xbf16>
    %29 = vector.shape_cast %26 : vector<16x128xbf16> to vector<1x16x128xbf16>
    tpu.vector_store %arg7[%c0_18, %c0_19, %c0_20], %29 {strides = array<i32>} : memref<1x16x128xbf16, #tpu.memory_space<vmem>>, vector<1x16x128xbf16>,
    return
  }
  func.func @transform_0(%arg0: i32, %arg1: i32, %arg2: i32) -> (i32, i32, i32) {
    %c0_i32 = arith.constant 0 : i32
    %c0_i32_0 = arith.constant 0 : i32
    return %arg0, %arg1, %c0_i32 : i32, i32, i32
  }
  func.func @transform_1(%arg0: i32, %arg1: i32, %arg2: i32) -> (i32, i32, i32, i32) {
    %c0_i32 = arith.constant 0 : i32
    %c0_i32_0 = arith.constant 0 : i32
    %c0_i32_1 = arith.constant 0 : i32
    return %arg0, %arg1, %c0_i32, %c0_i32_0 : i32, i32, i32, i32
  }
  func.func @transform_2(%arg0: i32, %arg1: i32, %arg2: i32) -> (i32, i32, i32) {
    %c0_i32 = arith.constant 0 : i32
    %c0_i32_0 = arith.constant 0 : i32
    %c0_i32_1 = arith.constant 0 : i32
    return %c0_i32, %c0_i32_0, %arg2 : i32, i32, i32
  }
  func.func @transform_3(%arg0: i32, %arg1: i32, %arg2: i32) -> (i32, i32) {
    %c0_i32 = arith.constant 0 : i32
    %c0_i32_0 = arith.constant 0 : i32
    return %c0_i32, %arg2 : i32, i32
  }
  func.func @transform_4(%arg0: i32, %arg1: i32, %arg2: i32) -> (i32, i32, i32) {
    %c0_i32 = arith.constant 0 : i32
    return %arg0, %arg1, %arg2 : i32, i32, i32
  }
}

</mosaic_0001>

<bundles_post_ra>
// kernel: conv_block_1d.1
= control target key start
LH: loop header
LB: loop body
LE: loop exit
PB: predicated region body
PF: predicated region fallthrough
CT: control target
= control target key end

     0   :  { %s1005_s15 = smov 0   ;;  %s1007_s16 = smov 0   ;;  %s1124_s0 = inlined_call_operand.vmem [shape: bf16[2,32,128], index: 0, kind: input, shape index: {}]   ;;  %s1125_s1 = inlined_call_operand.vmem [shape: bf16[2,1,16,128], index: 1, kind: input, shape index: {}]   ;;  %s1126_s2 = inlined_call_operand.vmem [shape: bf16[3,128,128], index: 2, kind: input, shape index: {}]   ;;  %s1127_s3 = inlined_call_operand.vmem [shape: f32[1,128], index: 3, kind: input, shape index: {}]   ;;  %s1128_s4 = inlined_call_operand.vmem [shape: bf16[2,16,128], index: 4, kind: output, shape index: {}]  }
   0x1   :  { %s1009_s17 = smov 0  }
   0x2 LB: > { %s33_s18 = sadd.s32 1, %s974_s16  ;;  %p757_p0 = scmp.ge.s32.totalorder %s978_s17, 1  ;;  %s978_s17 = sphi %s1009_s17, %s14_s17   ;;  %s974_s16 = sphi %s1007_s16, %s1130_s16   ;;  %s970_s15 = sphi %s1005_s15, %s1129_s15  }
   0x3   : > { %p35_p1 = scmp.ge.s32.totalorder %s33_s18, 2  ;;  %p225_p2 = scmp.lt.s32.totalorder %s978_s17, 3 }
   0x5   : > { %s1132_s18 = smov (%p35_p1, %s33_s18), 0  ;;  %p226_p3 = pnand %p757_p0, %p225_p2 }
   0x6   : > { %p279_p4 = scmp.lt.s32.totalorder (!%p226_p3), %s970_s15, 1 }
   0x7   : > { %229 = sbr.rel (%p226_p3) target bundleno = 195 (0xc3), region = 36 }
   0xc   : > { %v917_v0 = vld [vmem:[%s1126_s2 + $0x78] sm:$0xff]  ;;  %v916_v3 = vld [vmem:[%s1126_s2 + $0x70] sm:$0xff]  ;;  %s1134_s15 = smov (!%p279_p4, %s970_s15), 1  ;;  %v915_v6 = vld [vmem:[%s1126_s2 + $0x68] sm:$0xff]  ;;  %vm357_vm0 = vcmask 1047552   ;;  %vm505_vm3 = vcmask 1046528  }
   0xd   : > { %v909_v1 = vld [vmem:[%s1126_s2 + $0x38] sm:$0xff]  ;;  %426 = vmatpush.bf16.msra.mxu0 %v917_v0  ;;  %v908_v4 = vld [vmem:[%s1126_s2 + $0x30] sm:$0xff]  ;;  %s899_s5 = sshll.u32 %s1134_s15, 3  ;;  %v907_v7 = vld [vmem:[%s1126_s2 + $0x28] sm:$0xff]  ;;  %s898_s12 = sshll.u32 %s1134_s15, 4 }
   0xe   : > { %v925_v2 = vld [vmem:[%s1126_s2 + $0xb8] sm:$0xff]  ;;  %489 = vmatpush.bf16.msra.mxu1 %v909_v1  ;;  %v924_v5 = vld [vmem:[%s1126_s2 + $0xb0] sm:$0xff]  ;;  %v923_v8 = vld [vmem:[%s1126_s2 + $0xa8] sm:$0xff]  ;;  %s296_s19 = scalar_lea.vmem %s1125_s1, %s899_s5  ;;  %s286_s28 = scalar_lea.vmem %s1124_s0, %s898_s12  ;;  %vm358_vm1 = vsmask.f32 7424 }
   0xf   : > { %575 = vmatpush.bf16.msra.mxu2 %v925_v2  ;;  %v914_v9 = vld [vmem:[%s1126_s2 + $0x60] sm:$0xff]  ;;  %v913_v13 = vld [vmem:[%s1126_s2 + $0x58] sm:$0xff]  ;;  %v912_v18 = vld [vmem:[%s1126_s2 + $0x50] sm:$0xff]  ;;  %s315_s11 = scalar_lea.vmem %s1128_s4, %s899_s5 }
  0x10   : > { %v906_v10 = vld [vmem:[%s1126_s2 + $0x20] sm:$0xff]  ;;  %v905_v14 = vld [vmem:[%s1126_s2 + $0x18] sm:$0xff]  ;;  %v904_v19 = vld [vmem:[%s1126_s2 + $0x10] sm:$0xff] }
  0x11   : > { %427 = vmatpush.bf16.msra.mxu0 %v916_v3  ;;  %v922_v11 = vld [vmem:[%s1126_s2 + $0xa0] sm:$0xff]  ;;  %v921_v17 = vld [vmem:[%s1126_s2 + $0x98] sm:$0xff]  ;;  %v920_v22 = vld [vmem:[%s1126_s2 + $0x90] sm:$0xff] }
  0x12   : > { %490 = vmatpush.bf16.msra.mxu1 %v908_v4  ;;  %v335_v12 = vld [vmem:[%s296_s19] sm:$0xf]  ;;  %v911_v23 = vld [vmem:[%s1126_s2 + $0x48] sm:$0xff]  ;;  %vm359_vm2 = vmand %vm357_vm0, %vm358_vm1 }
  0x13   : > { %576 = vmatpush.bf16.msra.mxu2 %v924_v5  ;;  %v901_v15 = vld [vmem:[%s286_s28] sm:$0xff]  ;;  %v350_v16 = vunpack.c.l.b16 %v335_v12  ;;  %v903_v24 = vld [vmem:[%s1126_s2 + $0x8] sm:$0xff] }
  0x14   : > { %v344_v20 = vshll.u32 %v901_v15, 16  ;;  %v342_v25 = vshrl.u32 %v901_v15, 16  ;;  %v919_v28 = vld [vmem:[%s1126_s2 + $0x88] sm:$0xff]  ;;  %v910_v29 = vld [vmem:[%s1126_s2 + $0x40] sm:$0xff]  ;;  %v503_v34 = vrot.slane %v901_v15, 1 }
  0x15   : > { %428 = vmatpush.bf16.msra.mxu0 %v915_v6  ;;  %v351_v21 = vpack.c.b16 %v350_v16, %v350_v16  ;;  %v902_v30 = vld [vmem:[%s1126_s2] sm:$0xff] }
  0x16   : > { %491 = vmatpush.bf16.msra.mxu1 %v907_v7  ;;  %v346_v26 = vrot.slane %v344_v20, 1  ;;  %v918_v33 = vld [vmem:[%s1126_s2 + $0x80] sm:$0xff] }
  0x17   : > { %577 = vmatpush.bf16.msra.mxu2 %v923_v8  ;;  %v353_v27 = vshll.u32 %v351_v21, 16  ;;  %v504_v35 = vrot.slane %v351_v21, 1  ;;  %v955_v45 = vld [vmem:[%s1127_s3] ss:$0 sm:$0xff] }
  0x18   : > { %v347_v31 = vor.u32 %v346_v26, %v342_v25 }
  0x19   : > { %429 = vmatpush.bf16.msra.mxu0 %v914_v9  ;;  %v355_v32 = vrot.slane %v353_v27, 1  ;;  %v508_v37 = vsel %vm505_vm3, %v503_v34, %v504_v35 }
  0x1a   : > { %492 = vmatpush.bf16.msra.mxu1 %v906_v10 }
  0x1b   : > { %578 = vmatpush.bf16.msra.mxu2 %v922_v11  ;;  %v360_v36 = vsel %vm359_vm2, %v347_v31, %v355_v32 }
  0x1d   : > { %430 = vmatpush.bf16.msra.mxu0 %v913_v13 }
  0x1e   : > { %493 = vmatpush.bf16.msra.mxu1 %v905_v14 }
  0x1f   : > { %579 = vmatpush.bf16.msra.mxu2 %v921_v17 }
  0x21   : > { %431 = vmatpush.bf16.msra.mxu0 %v912_v18 }
  0x22   : > { %494 = vmatpush.bf16.msra.mxu1 %v904_v19 }
  0x23   : > { %580 = vmatpush.bf16.msra.mxu2 %v920_v22 }
  0x25   : > { %432 = vmatpush.bf16.msra.mxu0 %v911_v23 }
  0x26   : > { %495 = vmatpush.bf16.msra.mxu1 %v903_v24 }
  0x27   : > { %581 = vmatpush.bf16.msra.mxu2 %v919_v28 }
  0x29   : > { %433 = vmatpush.bf16.msra.mxu0 %v910_v29 }
  0x2a   : > { %496 = vmatpush.bf16.msra.mxu1 %v902_v30 }
  0x2b   : > { %582 = vmatpush.bf16.msra.mxu2 %v918_v33 }
  0x2c   : > { %434 = vmatmul.bf16.vlgmr.msra.gmra.mxu0 %v360_v36 }
  0x2d   : > { %497 = vmatmul.bf16.vlgmr.msra.gmra.mxu1 %v901_v15 }
  0x2e   : > { %583 = vmatmul.bf16.vlgmr.msra.gmra.mxu2 %v508_v37 }
  0xa9   : > { %v435_v38 = vpop.f32.mrf.mxu0 }
  0xaa   : > { %v498_v39 = vpop.f32.mrf.mxu1 }
  0xab   : > { %v499_v41 = vadd.f32 %v498_v39, %v435_v38 }
  0xb1   : > { %v584_v40 = vpop.f32.mrf.mxu2  ;;  %v437_v42 = vpop.f32.mrf.mxu0 }
  0xb2   : > { %v500_v43 = vpop.f32.mrf.mxu1  ;;  %v589_v44 = vadd.f32 %v584_v40, %v499_v41 }
  0xb3   : > { %v501_v46 = vadd.f32 %v500_v43, %v437_v42 }
  0xb4   : > { %v595_v48 = vadd.f32 %v955_v45, %v589_v44 }
  0xb6   : > { %v597_v51 = vmax.f32 %v595_v48, 0.0 }
  0xb9   : > { %v586_v47 = vpop.f32.mrf.mxu2 }
  0xba   : > { %v590_v49 = vadd.f32 %v586_v47, %v501_v46 }
  0xbc   : > { %v596_v50 = vadd.f32 %v955_v45, %v590_v49 }
  0xbe   : > { %v598_v52 = vmax.f32 %v596_v50, 0.0 }
  0xc0   : > { %v929_v53 = vpack.c.bf16 %v598_v52, %v597_v51 }
  0xc2   : > { %930 = vst [vmem:[%s315_s11] sm:$0xff] %v929_v53  }
  0xc3 PF: > { %s14_s17 = sadd.s32 1, %s978_s17   ;;  %s1129_s15 = smov %s974_s16 }
  0xc4   : > { %p11_p5 = scmp.ge.s32.totalorder %s14_s17, 4   ;;  %s1130_s16 = smov %s1132_s18 }
  0xc6   :  { %13 = sbr.rel (!%p11_p5) target bundleno = 2 (0x2), region = 77 }

</bundles_post_ra>
